<compile_context>
chip_gen: v7x
topology: tpu7x:2x2x1
jax: 0.10.0
libtpu: 0.0.40
codegen_flags: <defaults>
</compile_context>

<pallas_src>
import math
import functools

import jax
import jax.numpy as jnp
from jax import lax
from jax.experimental import pallas as pl
from jax.experimental.pallas import tpu as pltpu


def _round_up(x, m):
    return ((x + m - 1) // m) * m


def _pick_tile_p(n_patches, d_model, K, itemsize, budget_bytes=24 * 2**20, cap=1024):
    """Largest multiple-of-128 patch tile keeping the double-buffered working set
    (resident W + patch tile + output tile, x2 buffers) under `budget_bytes`."""
    tile = min(cap, _round_up(n_patches, 128))
    w_bytes = d_model * K * itemsize
    while tile > 128 and 2 * (w_bytes + (K + d_model) * tile * itemsize) > budget_bytes:
        tile -= 128
    return max(tile, 128)


def _conv_token_kernel(w_ref, a_ref, o_ref):
    # w_ref: (d_model, K)      -- full flattened conv weight, resident across the grid
    # a_ref: (K, tile_p)       -- im2col patches tile (patches on the lane axis)
    # o_ref: (d_model, tile_p) -- output tile, already in final (d_model, P) layout
    o_ref[...] = jnp.dot(
        w_ref[...], a_ref[...], preferred_element_type=jnp.float32
    ).astype(o_ref.dtype)


def _pallas_conv_matmul(w, patches, out_dtype, tile_p):
    """w: (d_model, K), patches: (B, K, P) -> (B, d_model, P).  Exact shapes, no pad."""
    d_model, K = w.shape
    B, _, P = patches.shape
    p_tiles = pl.cdiv(P, tile_p)
    itemsize = jnp.dtype(patches.dtype).itemsize

    step_bytes = (d_model * K + (K + d_model) * tile_p) * itemsize
    vmem_limit = int(min(48 * 2**20, max(32 * 2**20, 4 * step_bytes)))

    cost = pl.CostEstimate(
        flops=2 * B * d_model * P * K,
        transcendentals=0,
        bytes_accessed=(patches.size + w.size) * itemsize
        + B * d_model * P * jnp.dtype(out_dtype).itemsize,
    )

    return pl.pallas_call(
        _conv_token_kernel,
        out_shape=jax.ShapeDtypeStruct((B, d_model, P), out_dtype),
        grid=(B, p_tiles),
        in_specs=[
            # Full weight, constant block index -> fetched once, stays resident.
            pl.BlockSpec((d_model, K), lambda b, i: (0, 0)),
            # Patch tile: K is the full extent (exact contraction, no zero-pad needed);
            # the ragged last P tile is masked by Pallas.
            pl.BlockSpec((None, K, tile_p), lambda b, i: (b, 0, i)),
        ],
        out_specs=pl.BlockSpec((None, d_model, tile_p), lambda b, i: (b, 0, i)),
        compiler_params=pltpu.CompilerParams(
            dimension_semantics=("parallel", "parallel"),
            vmem_limit_bytes=vmem_limit,
        ),
        cost_estimate=cost,
    )(w, patches)


def cross_channel_token_embedding(x, weight, l_patch, stride=None):
    """
    x:      (B, 1, c_in, L)              -- PyTorch NCHW layout
    weight: (d_model, 1, c_in, l_patch)  -- PyTorch Conv2d weight (bias=False)
    returns (B, d_model, 1, n_patches),  n_patches = (L - l_patch)//stride + 1
    """
    if stride is None:
        stride = l_patch
    B, one, c_in, L = x.shape
    assert one == 1
    d_model = weight.shape[0]
    assert weight.shape == (d_model, 1, c_in, l_patch)
    n_patches = (L - l_patch) // stride + 1
    K = c_in * l_patch
    out_dtype = x.dtype

    x2 = x[:, 0]  # (B, c_in, L)

    # ---- im2col into (B, K, n_patches): K on sublanes, patches on the lane axis ----
    # l_patch strided slices (plain strided DMAs): patches4[b, c, t, p] = x2[b, c, p*stride + t].
    # No gather, no transpose; handles both non-overlapping and overlapping windows.
    cols = [
        lax.slice(
            x2,
            (0, 0, t),
            (B, c_in, t + (n_patches - 1) * stride + 1),
            (1, 1, stride),
        )
        for t in range(l_patch)
    ]  # each (B, c_in, n_patches)
    patches = jnp.stack(cols, axis=2).reshape(B, K, n_patches)

    # Flattened conv weight in matching (c, t) -> k = c*l_patch + t order.
    w = weight.reshape(d_model, K).astype(patches.dtype)

    tile_p = _pick_tile_p(n_patches, d_model, K, jnp.dtype(patches.dtype).itemsize)
    y = _pallas_conv_matmul(w, patches, out_dtype, tile_p)  # (B, d_model, n_patches)
    return y[:, :, None, :]                                 # (B, d_model, 1, n_patches)


def init_weight(key, c_in, l_patch, d_model):
    # kaiming_normal_(fan_in, nonlinearity='leaky_relu', negative_slope=0.01)
    fan_in = 1 * c_in * l_patch
    gain = math.sqrt(2.0 / (1.0 + 0.01 ** 2))
    std = gain / math.sqrt(fan_in)
    return std * jax.random.normal(key, (d_model, 1, c_in, l_patch), dtype=jnp.float32)


def _reference(x, weight, l_patch, stride):
    # Plain-JAX conv-as-einsum reference (same semantics as nn.Conv2d, no padding/bias).
    n_p = (x.shape[-1] - l_patch) // stride + 1
    cols = jnp.stack(
        [x[:, 0, :, p * stride: p * stride + l_patch] for p in range(n_p)], axis=1
    )  # (B, P, c_in, l_patch)
    return jnp.einsum(
        "bpcl,dcl->bdp", cols, weight[:, 0], precision=jax.lax.Precision.HIGHEST
    )[:, :, None, :]


if __name__ == "__main__":
    # Small, module-consistent shapes.
    B, c_in, L = 2, 4, 16
    l_patch = 4
    d_model = 32

    key = jax.random.PRNGKey(0)
    kx, kw = jax.random.split(key)
    x = jax.random.normal(kx, (B, 1, c_in, L), dtype=jnp.float32)
    weight = init_weight(kw, c_in, l_patch, d_model)

    # Case 1: default stride == l_patch (non-overlapping patches).
    fwd_default = jax.jit(
        functools.partial(cross_channel_token_embedding, l_patch=l_patch, stride=None)
    )
    out = jax.block_until_ready(fwd_default(x, weight))
    n_patches = (L - l_patch) // l_patch + 1
    ref = _reference(x, weight, l_patch, l_patch)
    assert out.shape == (B, d_model, 1, n_patches), out.shape
    assert jnp.allclose(out, ref, atol=1e-4, rtol=1e-4)

    # Case 2: overlapping stride (exercises the strided-slice im2col path).
    stride2 = 2
    fwd_overlap = jax.jit(
        functools.partial(cross_channel_token_embedding, l_patch=l_patch, stride=stride2)
    )
    out2 = jax.block_until_ready(fwd_overlap(x, weight))
    n_patches2 = (L - l_patch) // stride2 + 1
    ref2 = _reference(x, weight, l_patch, stride2)
    assert out2.shape == (B, d_model, 1, n_patches2), out2.shape
    assert jnp.allclose(out2, ref2, atol=1e-4, rtol=1e-4)

    print("KERNEL_OK")
</pallas_src>

<mosaic_0001>
module attributes {stable_mosaic.version = 11 : i64} {
  func.func @_conv_token_kernel(%arg0: i32, %arg1: i32, %arg2: memref<32x16xf32, #tpu.memory_space<vmem>>, %arg3: memref<1x16x128xf32, #tpu.memory_space<vmem>>, %arg4: memref<1x32x128xf32, #tpu.memory_space<vmem>>) attributes {dimension_semantics = [#tpu.dimension_semantics<parallel>, #tpu.dimension_semantics<parallel>], iteration_bounds = array<i64: 2, 1>, scalar_prefetch = 0 : i64, scratch_operands = 0 : i64, tpu.core_type = #tpu.core_type<tc>, window_params = [{pipeline_mode = #tpu.pipeline_mode<synchronous>, transform_indices = @transform_0, window_bounds = array<i64: 32, 16>}, {transform_indices = @transform_1, window_bounds = array<i64: 1, 16, 128>}, {transform_indices = @transform_2, window_bounds = array<i64: 1, 32, 128>}]} {
    %c0 = arith.constant 0 : index
    %c0_0 = arith.constant 0 : index
    %0 = vector.load %arg2[%c0, %c0_0] : memref<32x16xf32, #tpu.memory_space<vmem>>, vector<32x16xf32>
    %c0_1 = arith.constant 0 : index
    %c0_2 = arith.constant 0 : index
    %c0_3 = arith.constant 0 : index
    %1 = vector.load %arg3[%c0_1, %c0_2, %c0_3] : memref<1x16x128xf32, #tpu.memory_space<vmem>>, vector<1x16x128xf32>
    %2 = vector.shape_cast %1 : vector<1x16x128xf32> to vector<16x128xf32>
    %cst = arith.constant dense<0.000000e+00> : vector<32x128xf32>
    %3 = tpu.matmul %0, %2, %cst {dimension_numbers = #tpu.dot_dimension_numbers<[1], [0], [0], [1], [0, 0, 1, 1], [], []>} : vector<32x16xf32>, vector<16x128xf32>, vector<32x128xf32> -> vector<32x128xf32>
    %c0_4 = arith.constant 0 : index
    %c0_5 = arith.constant 0 : index
    %c0_6 = arith.constant 0 : index
    %4 = vector.load %arg4[%c0_4, %c0_5, %c0_6] : memref<1x32x128xf32, #tpu.memory_space<vmem>>, vector<1x32x128xf32>
    %5 = vector.shape_cast %4 : vector<1x32x128xf32> to vector<32x128xf32>
    %6 = vector.shape_cast %3 : vector<32x128xf32> to vector<1x32x128xf32>
    tpu.vector_store %arg4[%c0_4, %c0_5, %c0_6], %6 {strides = array<i32>} : memref<1x32x128xf32, #tpu.memory_space<vmem>>, vector<1x32x128xf32>,
    return
  }
  func.func @transform_0(%arg0: i32, %arg1: i32) -> (i32, i32) {
    %c0_i32 = arith.constant 0 : i32
    %c0_i32_0 = arith.constant 0 : i32
    %c0_i32_1 = arith.constant 0 : i32
    return %c0_i32, %c0_i32_0 : i32, i32
  }
  func.func @transform_1(%arg0: i32, %arg1: i32) -> (i32, i32, i32) {
    %c0_i32 = arith.constant 0 : i32
    %c0_i32_0 = arith.constant 0 : i32
    return %arg0, %c0_i32, %arg1 : i32, i32, i32
  }
  func.func @transform_2(%arg0: i32, %arg1: i32) -> (i32, i32, i32) {
    %c0_i32 = arith.constant 0 : i32
    %c0_i32_0 = arith.constant 0 : i32
    return %arg0, %c0_i32, %arg1 : i32, i32, i32
  }
}

</mosaic_0001>

<bundles_post_ra>
// kernel: cross_channel_token_embedding.1
= control target key start
LH: loop header
LB: loop body
LE: loop exit
PB: predicated region body
PF: predicated region fallthrough
CT: control target
= control target key end

     0   :  { %s468_s9 = smov 0   ;;  %s470_s10 = smov 0   ;;  %s517_s0 = inlined_call_operand.vmem [shape: f32[32,16], index: 0, kind: input, shape index: {}]   ;;  %s518_s1 = inlined_call_operand.vmem [shape: f32[2,16,4], index: 1, kind: input, shape index: {}]   ;;  %s519_s2 = inlined_call_operand.vmem [shape: f32[2,32,4], index: 2, kind: output, shape index: {}]  }
   0x1   :  { %s472_s11 = smov 0  }
   0x2 LB: > { %s24_s12 = sadd.s32 1, %s447_s10  ;;  %p370_p0 = scmp.ge.s32.totalorder %s451_s11, 1  ;;  %s451_s11 = sphi %s472_s11, %s12_s11   ;;  %s447_s10 = sphi %s470_s10, %s521_s10   ;;  %s443_s9 = sphi %s468_s9, %s520_s9  }
   0x3   : > { %p26_p1 = scmp.ge.s32.totalorder %s24_s12, 2  ;;  %p131_p2 = scmp.lt.s32.totalorder %s451_s11, 3 }
   0x5   : > { %s523_s12 = smov (%p26_p1, %s24_s12), 0  ;;  %p132_p3 = pnand %p370_p0, %p131_p2 }
   0x6   : > { %p159_p4 = scmp.lt.s32.totalorder (!%p132_p3), %s443_s9, 1  ;;  %v175_v0 = vld [vmem:[%s517_s0] sm:$0xff] (!%p132_p3)  ;;  %vm181_vm0 = vcmask (!%p132_p3), 130048   ;;  %v177_v1 = vld [vmem:[%s517_s0 + $0x10] sm:$0xff] (!%p132_p3)  ;;  %v176_v5 = vld [vmem:[%s517_s0 + $0x8] sm:$0xff] (!%p132_p3) }
   0x7   : > { %135 = sbr.rel (%p132_p3) target bundleno = 238 (0xee), region = 28  ;;  %393 = vmatprep.mubr.msk.f32.mxu0 (!%p132_p3), %vm181_vm0, %v175_v0  ;;  %396 = vmatprep.mubr.msk.f32.mxu1 (!%p132_p3), %vm181_vm0, %v177_v1  ;;  %v178_v6 = vld [vmem:[%s517_s0 + $0x18] sm:$0xff] (!%p132_p3) }
   0xe   : > { %s525_s9 = smov (!%p159_p4, %s443_s9), 1 }
   0xf   : > { %s381_s17 = sshll.u32 %s525_s9, 4  ;;  %s382_s25 = sshll.u32 %s525_s9, 5 }
  0x10   : > { %s166_s20 = scalar_lea.vmem %s518_s1, %s381_s17  ;;  %s174_s28 = scalar_lea.vmem %s519_s2, %s382_s25 }
  0x11   : > { %v179_v2 = vld [vmem:[%s166_s20] sm:$0xff]  ;;  %v180_v3 = vld [vmem:[%s166_s20 + $0x8] sm:$0xff] }
  0x12   : > { %v399_v4 = vpack.c.bf16 %v180_v3, %v179_v2 }
  0x14   : > { %400 = vmatprep.subr.bf16.mxu0 %v399_v4  ;;  %403 = vmatprep.subr.bf16.mxu1 %v399_v4 }
  0x15   : > { %402 = vmatpush3.bf16.msra.mxu0 %v399_v4  ;;  %404 = vmatpush3.bf16.msra.mxu1 %v399_v4 }
  0x18   : > { %394 = vmatmul.mubr.msk.f32.vlgmr.msra.gmra.mrb[0].mxu0 %vm181_vm0, %v176_v5  ;;  %397 = vmatmul.mubr.msk.f32.vlgmr.msra.gmra.mrb[0].mxu1 %vm181_vm0, %v178_v6 }
  0xeb   : > { %v395_v7 = vpop.f32.mrb[0].mxu0  ;;  %v398_v8 = vpop.f32.mrb[0].mxu1 }
  0xec   : > { %280 = vst [vmem:[%s174_s28 + $0x8] sm:$0xff] %v395_v7  ;;  %282 = vst [vmem:[%s174_s28 + $0x18] sm:$0xff] %v398_v8  ;;  %v260_v9 = vpop.f32.mrb[1].mxu0  ;;  %v270_v10 = vpop.f32.mrb[1].mxu1 }
  0xed   : > { %279 = vst [vmem:[%s174_s28] sm:$0xff] %v260_v9  ;;  %281 = vst [vmem:[%s174_s28 + $0x10] sm:$0xff] %v270_v10 }
  0xee PF: > { %s12_s11 = sadd.s32 1, %s451_s11   ;;  %s520_s9 = smov %s447_s10 }
  0xef   : > { %p9_p5 = scmp.ge.s32.totalorder %s12_s11, 4   ;;  %s521_s10 = smov %s523_s12 }
  0xf1   :  { %11 = sbr.rel (!%p9_p5) target bundleno = 2 (0x2), region = 58 }

</bundles_post_ra>
